<compile_context>
chip_gen: v6e
topology: v6e:2x2x1
jax: 0.10.0
libtpu: 0.0.40
codegen_flags: <defaults>
</compile_context>

<pallas_src>
import jax
import jax.numpy as jnp
from jax.experimental import pallas as pl
from jax.experimental.pallas import tpu as pltpu

# ----- model / test configuration (small, consistent with the module) -----
B, T, C = 2, 8, 32         # batch, seq len, n_embd
H = 4                      # n_head
N = C // H                 # head_size
BT = B * T
N_LAYER = 2
LAYER_ID = 1
EPS_LN = 1e-5
EPS_GN = 1e-5 * 64
assert T & (T - 1) == 0    # power-of-two T -> row mask uses a bitwise AND (no int div)

# packed-parameter layout -----------------------------------------------------
VEC_ORDER = ("ln1_w", "ln1_b", "maa_k", "maa_v", "maa_r", "maa_g",
             "br", "bk", "bv", "bg", "bo", "gnw", "gnb",
             "ln2_w", "ln2_b", "cmaa_k", "cmaa_r", "bval", "brec")
VIDX = {n: i for i, n in enumerate(VEC_ORDER)}

MAT_ORDER = ("wr", "wk", "wv", "wg", "wo", "wrec", "wval")
MAT_ROWS = {"wr": C, "wk": C, "wv": C, "wg": C, "wo": C, "wrec": C, "wval": 3 * C}
MAT_OFF = {}
_off = 0
for _n in MAT_ORDER:
    MAT_OFF[_n] = _off
    _off += MAT_ROWS[_n]
MAT_TOTAL = _off


# --------------------------------- kernel ------------------------------------
def _rwkv_block_kernel(x_ref, vec_ref, mat_ref, wkey_ref, bkey_ref,
                       wbig_ref, hmask_ref, gnavg_ref, o_ref):
    f32 = jnp.float32
    bf16 = jnp.bfloat16

    x = x_ref[...]                                   # (BT, C) f32
    vecs = vec_ref[...]                              # (NVEC, C) f32 - one bulk load

    def vrow(name):                                  # (1, C) vector param from registers
        i = VIDX[name]
        return vecs[i:i + 1, :]

    def mat(name):                                   # bf16 weight tile (aligned slice)
        o = MAT_OFF[name]
        return mat_ref[o:o + MAT_ROWS[name], :]

    def bdot(a, w):                                  # single bf16 MXU pass, f32 accumulate
        return jnp.dot(a.astype(bf16), w, preferred_element_type=f32)

    def sigmoid(z):                                  # one EUP tanh (exact sigmoid)
        return 0.5 * (jnp.tanh(0.5 * z) + 1.0)

    def layernorm(v, w, b):
        mu = jnp.mean(v, axis=-1, keepdims=True)
        var = jnp.mean((v - mu) ** 2, axis=-1, keepdims=True)
        return (v - mu) * jax.lax.rsqrt(var + EPS_LN) * w + b

    # token shift: row (b, t) <- row (b, t-1), row (b, 0) <- 0  (== ZeroPad2d((0,0,1,-1)))
    pos = jax.lax.broadcasted_iota(jnp.int32, (BT, 1), 0)
    not_first = (pos & (T - 1)) != 0                 # hoisted once, reused by both mixes

    def token_shift(v):
        return jnp.where(not_first, pltpu.roll(v, 1, 0), 0.0)

    # ------------------------- TimeMix (RWKV_TimeMix_x051a) -------------------------
    xn = layernorm(x, vrow("ln1_w"), vrow("ln1_b"))
    xx = token_shift(xn) - xn
    xk = xn + xx * vrow("maa_k")
    xv = xn + xx * vrow("maa_v")
    xr = xn + xx * vrow("maa_r")
    xg = xn + xx * vrow("maa_g")

    # full-width projections (one bf16 MXU pass each)
    r = bdot(xr, mat("wr")) + vrow("br")
    k = bdot(xk, mat("wk")) + vrow("bk")
    v = bdot(xv, mat("wv")) + vrow("bv")
    g = bdot(xg, mat("wg")) + vrow("bg")
    g = g * sigmoid(g)                               # SiLU gate

    # block-diagonal WKV: stack k/v over heads, mask to each head's channel block, then
    # one (BT,HBT) and one (HBT,C) matmul cover every (head, batch) pair at once.
    hmask = hmask_ref[...]                           # (H*BT, C) 0/1 head-block mask, f32
    kstk = (jnp.concatenate([k] * H, axis=0) * hmask).astype(bf16)   # (H*BT, C)
    vstk = (jnp.concatenate([v] * H, axis=0) * hmask).astype(bf16)   # (H*BT, C)
    att = jax.lax.dot_general(r.astype(bf16), kstk, (((1,), (1,)), ((), ())),
                              preferred_element_type=f32)            # (BT, H*BT)
    att = att * wbig_ref[...]                        # decay / u / causal / batch-block mask
    y = jnp.dot(att.astype(bf16), vstk, preferred_element_type=f32)  # (BT, C)

    # GroupNorm(H groups over C) == per-head, per-timestep normalization.
    # Per-head statistics via the precomputed block-averaging matrix A (A[i,j]=1/N in-head).
    gnavg = gnavg_ref[...]                           # (C, C) bf16
    mu = jnp.dot(y.astype(bf16), gnavg, preferred_element_type=f32)
    d = y - mu
    var = jnp.dot((d * d).astype(bf16), gnavg, preferred_element_type=f32)
    yn = d * jax.lax.rsqrt(var + EPS_GN)
    yn = (yn * vrow("gnw") + vrow("gnb")) * g

    x1 = x + bdot(yn, mat("wo")) + vrow("bo")        # first residual

    # ----------------------- ChannelMix (RWKV_ChannelMix_x051a) ----------------------
    x2 = layernorm(x1, vrow("ln2_w"), vrow("ln2_b"))
    xx2 = token_shift(x2) - x2
    xk2 = x2 + xx2 * vrow("cmaa_k")
    xr2 = x2 + xx2 * vrow("cmaa_r")

    kk = bdot(xk2, wkey_ref[...]) + bkey_ref[...]
    kk = jnp.maximum(kk, 0.0)
    kk = kk * kk                                     # relu(x)**2
    vv = bdot(kk, mat("wval")) + vrow("bval")
    rr = sigmoid(bdot(xr2, mat("wrec")) + vrow("brec"))

    o_ref[...] = x1 + rr * vv                        # second residual
    # TODO(synk): dropout layers are identity (p=0.0); no in-kernel RNG needed.
    # TODO(synk): for T % 128 == 0 the PyTorch module runs a chunked, state-carrying WKV
    #             loop; this kernel implements only the single-chunk (Q = T) form.
    # TODO(synk): when scaling up (real C / long T), add a token-tile grid with
    #             dimension_semantics=("parallel",) so v7x's 2 TensorCores are both used
    #             and the per-step working set fits v7x's 64 MiB VMEM.


# --------------------------------- wrapper -----------------------------------
def pack_params(params):
    """One-time packing of the many tiny parameters + precomputed masks (hoisted out of
    the per-call path per the performance feedback)."""
    f32 = jnp.float32
    bf16 = jnp.bfloat16

    vec_pack = jnp.concatenate([params[n].reshape(1, C) for n in VEC_ORDER],
                               axis=0).astype(f32)                    # (19, C)
    mat_pack = jnp.concatenate([params[n] for n in MAT_ORDER],
                               axis=0).astype(bf16)                   # (9C, C)
    assert mat_pack.shape == (MAT_TOTAL, C)
    wkey_pack = params["wkey"].astype(bf16)                           # (C, 3C)
    bkey = params["bkey"].reshape(1, 3 * C).astype(f32)               # (1, 3C)

    # decay / u / causal / batch-block mask laid out as (BT, H*BT):
    #   wbig[i, h*BT + j] = wattn[h, t_i, t_j] * (b_i == b_j)
    wattn = params["wattn"]                                           # (H, T, T)
    bb = jnp.arange(BT) // T
    tt = jnp.arange(BT) % T
    same_batch = (bb[:, None] == bb[None, :]).astype(f32)             # (BT, BT)
    w_full = wattn[:, tt][:, :, tt] * same_batch[None]                # (H, BT, BT)
    wbig = jnp.transpose(w_full, (1, 0, 2)).reshape(BT, H * BT).astype(f32)

    # 0/1 head-block mask for the stacked k/v: hmask[h*BT + j, c] = (c // N == h)
    cc = jnp.arange(C) // N
    hh = jnp.arange(H * BT) // BT
    hmask = (hh[:, None] == cc[None, :]).astype(f32)                  # (H*BT, C)

    # GroupNorm block-averaging matrix: A[i, j] = 1/N if same head else 0 (1/8 exact in bf16)
    gnavg = ((cc[:, None] == cc[None, :]).astype(f32) / N).astype(bf16)   # (C, C)

    return dict(vec=vec_pack, mat=mat_pack, wkey=wkey_pack, bkey=bkey,
                wbig=wbig, hmask=hmask, gnavg=gnavg)


_block_call = pl.pallas_call(
    _rwkv_block_kernel,
    out_shape=jax.ShapeDtypeStruct((BT, C), jnp.float32),
)


def rwkv_block_forward(x, packed):
    out = _block_call(x.reshape(BT, C), packed["vec"], packed["mat"],
                      packed["wkey"], packed["bkey"], packed["wbig"],
                      packed["hmask"], packed["gnavg"])
    return out.reshape(B, T, C)


# ----------------------------- deterministic init -----------------------------
def init_params(key):
    ks = list(jax.random.split(key, 20))

    def lin_w(k, fan_in, fan_out):
        return jax.random.normal(k, (fan_in, fan_out), jnp.float32) * 0.02

    def lin_b(k, fan_out):
        return jax.random.normal(k, (1, fan_out), jnp.float32) * 0.02

    i = jnp.arange(C, dtype=jnp.float32)
    ddd = i / C
    r1 = 1.0 - LAYER_ID / N_LAYER            # ratio_1_to_almost0
    r0 = LAYER_ID / (N_LAYER - 1)            # ratio_0_to_1

    maa_k = (1.0 - ddd ** r1).reshape(1, C)
    maa_v = (1.0 - (ddd ** r1 + 0.3 * r0)).reshape(1, C)
    maa_r = (1.0 - ddd ** (0.5 * r1)).reshape(1, C)
    maa_g = (1.0 - ddd ** (0.5 * r1)).reshape(1, C)

    hh = jnp.arange(H, dtype=jnp.float32)
    decay_speed = -6.0 + 5.0 * (hh / (H - 1)) ** (0.7 + 1.3 * r0)    # (H,)
    time_faaaa = r0 * (1.0 - hh / (H - 1))                            # (H,)

    # per-head (T, T) decay matrix: W[t,s] = w^(t-s-1) if s<t, u if s==t, 0 if s>t
    w_scalar = jnp.exp(-jnp.exp(decay_speed))                         # (H,)
    t = jnp.arange(T, dtype=jnp.float32)
    diff = t[:, None] - t[None, :]                                    # (T, T)
    wpow = w_scalar[:, None, None] ** jnp.maximum(diff[None] - 1.0, 0.0)
    wattn = jnp.where(diff[None] > 0, wpow, 0.0)
    wattn = jnp.where(diff[None] == 0, time_faaaa[:, None, None], wattn)

    params = dict(
        ln1_w=jnp.ones((1, C), jnp.float32), ln1_b=jnp.zeros((1, C), jnp.float32),
        maa_k=maa_k, maa_v=maa_v, maa_r=maa_r, maa_g=maa_g,
        wr=lin_w(ks[0], C, C), br=lin_b(ks[1], C),
        wk=lin_w(ks[2], C, C), bk=lin_b(ks[3], C),
        wv=lin_w(ks[4], C, C), bv=lin_b(ks[5], C),
        wg=lin_w(ks[6], C, C), bg=lin_b(ks[7], C),
        wo=lin_w(ks[8], C, C), bo=lin_b(ks[9], C),
        wattn=wattn.astype(jnp.float32),
        gnw=jnp.ones((1, C), jnp.float32), gnb=jnp.zeros((1, C), jnp.float32),
        ln2_w=jnp.ones((1, C), jnp.float32), ln2_b=jnp.zeros((1, C), jnp.float32),
        cmaa_k=(1.0 - ddd ** r1).reshape(1, C),
        cmaa_r=(1.0 - ddd ** r1).reshape(1, C),
        wkey=lin_w(ks[10], C, 3 * C), bkey=lin_b(ks[11], 3 * C),
        wval=lin_w(ks[12], 3 * C, C), bval=lin_b(ks[13], C),
        wrec=lin_w(ks[14], C, C), brec=lin_b(ks[15], C),
    )
    return params


# ----------------------------- plain-JAX reference -----------------------------
def reference_forward(x, p):
    def ln(v, w, b, eps):
        mu = v.mean(-1, keepdims=True)
        var = ((v - mu) ** 2).mean(-1, keepdims=True)
        return (v - mu) / jnp.sqrt(var + eps) * w + b

    def shift(v):  # (B, T, C): row t <- row t-1, row 0 <- 0
        return jnp.pad(v, ((0, 0), (1, 0), (0, 0)))[:, :T, :]

    xn = ln(x, p["ln1_w"], p["ln1_b"], EPS_LN)
    xx = shift(xn) - xn
    xk = xn + xx * p["maa_k"]; xv = xn + xx * p["maa_v"]
    xr = xn + xx * p["maa_r"]; xg = xn + xx * p["maa_g"]
    r = (xr @ p["wr"] + p["br"]).reshape(B, T, H, N).transpose(0, 2, 1, 3)   # (B,H,T,N)
    k = (xk @ p["wk"] + p["bk"]).reshape(B, T, H, N).transpose(0, 2, 3, 1)   # (B,H,N,T)
    v = (xv @ p["wv"] + p["bv"]).reshape(B, T, H, N).transpose(0, 2, 1, 3)   # (B,H,T,N)
    g = jax.nn.silu(xg @ p["wg"] + p["bg"])
    att = jnp.einsum("bhtn,bhns->bhts", r, k) * p["wattn"][None]
    y = jnp.einsum("bhts,bhsn->bhtn", att, v)          # single chunk, state = 0
    y = y.transpose(0, 2, 1, 3).reshape(B * T, C)
    yg = y.reshape(B * T, H, N)
    mu = yg.mean(-1, keepdims=True)
    var = ((yg - mu) ** 2).mean(-1, keepdims=True)
    y = ((yg - mu) / jnp.sqrt(var + EPS_GN)).reshape(B * T, C) * p["gnw"] + p["gnb"]
    y = y.reshape(B, T, C) * g
    y = y @ p["wo"] + p["bo"]
    x1 = x + y

    x2 = ln(x1, p["ln2_w"], p["ln2_b"], EPS_LN)
    xx2 = shift(x2) - x2
    xk2 = x2 + xx2 * p["cmaa_k"]; xr2 = x2 + xx2 * p["cmaa_r"]
    kk = jnp.maximum(xk2 @ p["wkey"] + p["bkey"], 0.0) ** 2
    vv = kk @ p["wval"] + p["bval"]
    out = jax.nn.sigmoid(xr2 @ p["wrec"] + p["brec"]) * vv
    return x1 + out


if __name__ == "__main__":
    key = jax.random.PRNGKey(0)
    kx, kp = jax.random.split(key)
    x = jax.random.normal(kx, (B, T, C), jnp.float32)
    params = init_params(kp)

    # one-time packing (hoisted out of the per-call path)
    packed = pack_params(params)
    packed = jax.tree_util.tree_map(jax.block_until_ready, packed)

    out = jax.block_until_ready(rwkv_block_forward(x, packed))
    ref = jax.block_until_ready(reference_forward(x, params))

    assert out.shape == (B, T, C)
    max_err = float(jnp.max(jnp.abs(out - ref)))
    # both sides run at single-pass bf16 MXU precision (kernel: explicit casts)
    assert jnp.allclose(out, ref, atol=2e-3, rtol=2e-3), max_err
    print("KERNEL_OK")
</pallas_src>

<mosaic_0001>
module attributes {stable_mosaic.version = 11 : i64} {
  func.func @_rwkv_block_kernel(%arg0: memref<16x32xf32, #tpu.memory_space<vmem>>, %arg1: memref<19x32xf32, #tpu.memory_space<vmem>>, %arg2: memref<288x32xbf16, #tpu.memory_space<vmem>>, %arg3: memref<32x96xbf16, #tpu.memory_space<vmem>>, %arg4: memref<1x96xf32, #tpu.memory_space<vmem>>, %arg5: memref<16x64xf32, #tpu.memory_space<vmem>>, %arg6: memref<64x32xf32, #tpu.memory_space<vmem>>, %arg7: memref<32x32xbf16, #tpu.memory_space<vmem>>, %arg8: memref<16x32xf32, #tpu.memory_space<vmem>>) attributes {dimension_semantics = [], scalar_prefetch = 0 : i64, scratch_operands = 0 : i64, tpu.core_type = #tpu.core_type<tc>} {
    %c0 = arith.constant 0 : index
    %c0_0 = arith.constant 0 : index
    %0 = vector.load %arg0[%c0, %c0_0] : memref<16x32xf32, #tpu.memory_space<vmem>>, vector<16x32xf32>
    %c0_1 = arith.constant 0 : index
    %c0_2 = arith.constant 0 : index
    %1 = vector.load %arg1[%c0_1, %c0_2] : memref<19x32xf32, #tpu.memory_space<vmem>>, vector<19x32xf32>
    %2 = tpu.iota {dimensions = array<i32: 0>} : vector<16x1xi32>
    %c7_i32 = arith.constant 7 : i32
    %3 = vector.broadcast %c7_i32 : i32 to vector<16x1xi32>
    %4 = arith.andi %2, %3 : vector<16x1xi32>
    %c0_i32 = arith.constant 0 : i32
    %5 = vector.broadcast %c0_i32 : i32 to vector<16x1xi32>
    %6 = arith.cmpi ne, %4, %5 : vector<16x1xi32>
    %7 = vector.extract_strided_slice %1 {offsets = [0, 0], sizes = [1, 32], strides = [1, 1]} : vector<19x32xf32> to vector<1x32xf32>
    %8 = vector.extract_strided_slice %1 {offsets = [1, 0], sizes = [1, 32], strides = [1, 1]} : vector<19x32xf32> to vector<1x32xf32>
    %cst = arith.constant dense<0.000000e+00> : vector<16xf32>
    %9 = vector.multi_reduction <add>, %0, %cst [1] : vector<16x32xf32> to vector<16xf32>
    %10 = vector.shape_cast %9 : vector<16xf32> to vector<16x1xf32>
    %cst_3 = arith.constant 3.200000e+01 : f32
    %11 = vector.broadcast %cst_3 : f32 to vector<16x1xf32>
    %12 = arith.divf %10, %11 : vector<16x1xf32>
    %13 = vector.broadcast %12 : vector<16x1xf32> to vector<16x32xf32>
    %14 = arith.subf %0, %13 : vector<16x32xf32>
    %15 = arith.mulf %14, %14 : vector<16x32xf32>
    %cst_4 = arith.constant dense<0.000000e+00> : vector<16xf32>
    %16 = vector.multi_reduction <add>, %15, %cst_4 [1] : vector<16x32xf32> to vector<16xf32>
    %17 = vector.shape_cast %16 : vector<16xf32> to vector<16x1xf32>
    %cst_5 = arith.constant 3.200000e+01 : f32
    %18 = vector.broadcast %cst_5 : f32 to vector<16x1xf32>
    %19 = arith.divf %17, %18 : vector<16x1xf32>
    %20 = vector.broadcast %12 : vector<16x1xf32> to vector<16x32xf32>
    %21 = arith.subf %0, %20 : vector<16x32xf32>
    %cst_6 = arith.constant 9.99999974E-6 : f32
    %22 = vector.broadcast %cst_6 : f32 to vector<16x1xf32>
    %23 = arith.addf %19, %22 : vector<16x1xf32>
    %24 = math.rsqrt %23 : vector<16x1xf32>
    %25 = vector.broadcast %24 : vector<16x1xf32> to vector<16x32xf32>
    %26 = arith.mulf %21, %25 : vector<16x32xf32>
    %27 = vector.broadcast %7 : vector<1x32xf32> to vector<16x32xf32>
    %28 = arith.mulf %26, %27 : vector<16x32xf32>
    %29 = vector.broadcast %8 : vector<1x32xf32> to vector<16x32xf32>
    %30 = arith.addf %28, %29 : vector<16x32xf32>
    %c1_i32 = arith.constant 1 : i32
    %31 = tpu.dynamic_rotate %30 by %c1_i32 dim 0 : vector<16x32xf32>, i32 -> vector<16x32xf32>
    %cst_7 = arith.constant 0.000000e+00 : f32
    %32 = vector.shape_cast %6 : vector<16x1xi1> to vector<16x1xi1>
    %33 = vector.broadcast %32 : vector<16x1xi1> to vector<16x32xi1>
    %34 = vector.broadcast %cst_7 : f32 to vector<16x32xf32>
    %35 = arith.select %33, %31, %34 : vector<16x32xi1>, vector<16x32xf32>
    %36 = arith.subf %35, %30 : vector<16x32xf32>
    %37 = vector.extract_strided_slice %1 {offsets = [2, 0], sizes = [1, 32], strides = [1, 1]} : vector<19x32xf32> to vector<1x32xf32>
    %38 = vector.broadcast %37 : vector<1x32xf32> to vector<16x32xf32>
    %39 = arith.mulf %36, %38 : vector<16x32xf32>
    %40 = arith.addf %30, %39 : vector<16x32xf32>
    %41 = vector.extract_strided_slice %1 {offsets = [3, 0], sizes = [1, 32], strides = [1, 1]} : vector<19x32xf32> to vector<1x32xf32>
    %42 = vector.broadcast %41 : vector<1x32xf32> to vector<16x32xf32>
    %43 = arith.mulf %36, %42 : vector<16x32xf32>
    %44 = arith.addf %30, %43 : vector<16x32xf32>
    %45 = vector.extract_strided_slice %1 {offsets = [4, 0], sizes = [1, 32], strides = [1, 1]} : vector<19x32xf32> to vector<1x32xf32>
    %46 = vector.broadcast %45 : vector<1x32xf32> to vector<16x32xf32>
    %47 = arith.mulf %36, %46 : vector<16x32xf32>
    %48 = arith.addf %30, %47 : vector<16x32xf32>
    %49 = vector.extract_strided_slice %1 {offsets = [5, 0], sizes = [1, 32], strides = [1, 1]} : vector<19x32xf32> to vector<1x32xf32>
    %50 = vector.broadcast %49 : vector<1x32xf32> to vector<16x32xf32>
    %51 = arith.mulf %36, %50 : vector<16x32xf32>
    %52 = arith.addf %30, %51 : vector<16x32xf32>
    %c0_8 = arith.constant 0 : index
    %c0_9 = arith.constant 0 : index
    %53 = vector.load %arg2[%c0_8, %c0_9] : memref<288x32xbf16, #tpu.memory_space<vmem>>, vector<32x32xbf16>
    %54 = arith.truncf %48 : vector<16x32xf32> to vector<16x32xbf16>
    %cst_10 = arith.constant dense<0.000000e+00> : vector<16x32xf32>
    %55 = tpu.matmul %54, %53, %cst_10 {dimension_numbers = #tpu.dot_dimension_numbers<[1], [0], [0], [1], [0, 0, 1, 1], [], []>} : vector<16x32xbf16>, vector<32x32xbf16>, vector<16x32xf32> -> vector<16x32xf32>
    %56 = vector.extract_strided_slice %1 {offsets = [6, 0], sizes = [1, 32], strides = [1, 1]} : vector<19x32xf32> to vector<1x32xf32>
    %57 = vector.broadcast %56 : vector<1x32xf32> to vector<16x32xf32>
    %58 = arith.addf %55, %57 : vector<16x32xf32>
    %c32 = arith.constant 32 : index
    %c0_11 = arith.constant 0 : index
    %59 = vector.load %arg2[%c32, %c0_11] : memref<288x32xbf16, #tpu.memory_space<vmem>>, vector<32x32xbf16>
    %60 = arith.truncf %40 : vector<16x32xf32> to vector<16x32xbf16>
    %cst_12 = arith.constant dense<0.000000e+00> : vector<16x32xf32>
    %61 = tpu.matmul %60, %59, %cst_12 {dimension_numbers = #tpu.dot_dimension_numbers<[1], [0], [0], [1], [0, 0, 1, 1], [], []>} : vector<16x32xbf16>, vector<32x32xbf16>, vector<16x32xf32> -> vector<16x32xf32>
    %62 = vector.extract_strided_slice %1 {offsets = [7, 0], sizes = [1, 32], strides = [1, 1]} : vector<19x32xf32> to vector<1x32xf32>
    %63 = vector.broadcast %62 : vector<1x32xf32> to vector<16x32xf32>
    %64 = arith.addf %61, %63 : vector<16x32xf32>
    %c64 = arith.constant 64 : index
    %c0_13 = arith.constant 0 : index
    %65 = vector.load %arg2[%c64, %c0_13] : memref<288x32xbf16, #tpu.memory_space<vmem>>, vector<32x32xbf16>
    %66 = arith.truncf %44 : vector<16x32xf32> to vector<16x32xbf16>
    %cst_14 = arith.constant dense<0.000000e+00> : vector<16x32xf32>
    %67 = tpu.matmul %66, %65, %cst_14 {dimension_numbers = #tpu.dot_dimension_numbers<[1], [0], [0], [1], [0, 0, 1, 1], [], []>} : vector<16x32xbf16>, vector<32x32xbf16>, vector<16x32xf32> -> vector<16x32xf32>
    %68 = vector.extract_strided_slice %1 {offsets = [8, 0], sizes = [1, 32], strides = [1, 1]} : vector<19x32xf32> to vector<1x32xf32>
    %69 = vector.broadcast %68 : vector<1x32xf32> to vector<16x32xf32>
    %70 = arith.addf %67, %69 : vector<16x32xf32>
    %c96 = arith.constant 96 : index
    %c0_15 = arith.constant 0 : index
    %71 = vector.load %arg2[%c96, %c0_15] : memref<288x32xbf16, #tpu.memory_space<vmem>>, vector<32x32xbf16>
    %72 = arith.truncf %52 : vector<16x32xf32> to vector<16x32xbf16>
    %cst_16 = arith.constant dense<0.000000e+00> : vector<16x32xf32>
    %73 = tpu.matmul %72, %71, %cst_16 {dimension_numbers = #tpu.dot_dimension_numbers<[1], [0], [0], [1], [0, 0, 1, 1], [], []>} : vector<16x32xbf16>, vector<32x32xbf16>, vector<16x32xf32> -> vector<16x32xf32>
    %74 = vector.extract_strided_slice %1 {offsets = [9, 0], sizes = [1, 32], strides = [1, 1]} : vector<19x32xf32> to vector<1x32xf32>
    %75 = vector.broadcast %74 : vector<1x32xf32> to vector<16x32xf32>
    %76 = arith.addf %73, %75 : vector<16x32xf32>
    %cst_17 = arith.constant 5.000000e-01 : f32
    %77 = vector.broadcast %cst_17 : f32 to vector<16x32xf32>
    %78 = arith.mulf %77, %76 : vector<16x32xf32>
    %79 = math.tanh %78 : vector<16x32xf32>
    %cst_18 = arith.constant 1.000000e+00 : f32
    %80 = vector.broadcast %cst_18 : f32 to vector<16x32xf32>
    %81 = arith.addf %79, %80 : vector<16x32xf32>
    %cst_19 = arith.constant 5.000000e-01 : f32
    %82 = vector.broadcast %cst_19 : f32 to vector<16x32xf32>
    %83 = arith.mulf %82, %81 : vector<16x32xf32>
    %84 = arith.mulf %76, %83 : vector<16x32xf32>
    %c0_20 = arith.constant 0 : index
    %c0_21 = arith.constant 0 : index
    %85 = vector.load %arg6[%c0_20, %c0_21] : memref<64x32xf32, #tpu.memory_space<vmem>>, vector<64x32xf32>
    %86 = tpu.concatenate %64, %64, %64, %64 in 0 : vector<16x32xf32>, vector<16x32xf32>, vector<16x32xf32>, vector<16x32xf32> -> vector<64x32xf32>
    %87 = arith.mulf %86, %85 : vector<64x32xf32>
    %88 = arith.truncf %87 : vector<64x32xf32> to vector<64x32xbf16>
    %89 = tpu.concatenate %70, %70, %70, %70 in 0 : vector<16x32xf32>, vector<16x32xf32>, vector<16x32xf32>, vector<16x32xf32> -> vector<64x32xf32>
    %90 = arith.mulf %89, %85 : vector<64x32xf32>
    %91 = arith.truncf %90 : vector<64x32xf32> to vector<64x32xbf16>
    %92 = arith.truncf %58 : vector<16x32xf32> to vector<16x32xbf16>
    %cst_22 = arith.constant dense<0.000000e+00> : vector<16x64xf32>
    %93 = tpu.matmul %92, %88, %cst_22 {dimension_numbers = #tpu.dot_dimension_numbers<[1], [1], [0], [0], [0, 0, 1, 0], [], []>} : vector<16x32xbf16>, vector<64x32xbf16>, vector<16x64xf32> -> vector<16x64xf32>
    %c0_23 = arith.constant 0 : index
    %c0_24 = arith.constant 0 : index
    %94 = vector.load %arg5[%c0_23, %c0_24] : memref<16x64xf32, #tpu.memory_space<vmem>>, vector<16x64xf32>
    %95 = arith.mulf %93, %94 : vector<16x64xf32>
    %96 = arith.truncf %95 : vector<16x64xf32> to vector<16x64xbf16>
    %cst_25 = arith.constant dense<0.000000e+00> : vector<16x32xf32>
    %97 = tpu.matmul %96, %91, %cst_25 {dimension_numbers = #tpu.dot_dimension_numbers<[1], [0], [0], [1], [0, 0, 1, 1], [], []>} : vector<16x64xbf16>, vector<64x32xbf16>, vector<16x32xf32> -> vector<16x32xf32>
    %c0_26 = arith.constant 0 : index
    %c0_27 = arith.constant 0 : index
    %98 = vector.load %arg7[%c0_26, %c0_27] : memref<32x32xbf16, #tpu.memory_space<vmem>>, vector<32x32xbf16>
    %99 = arith.truncf %97 : vector<16x32xf32> to vector<16x32xbf16>
    %cst_28 = arith.constant dense<0.000000e+00> : vector<16x32xf32>
    %100 = tpu.matmul %99, %98, %cst_28 {dimension_numbers = #tpu.dot_dimension_numbers<[1], [0], [0], [1], [0, 0, 1, 1], [], []>} : vector<16x32xbf16>, vector<32x32xbf16>, vector<16x32xf32> -> vector<16x32xf32>
    %101 = arith.subf %97, %100 : vector<16x32xf32>
    %102 = arith.mulf %101, %101 : vector<16x32xf32>
    %103 = arith.truncf %102 : vector<16x32xf32> to vector<16x32xbf16>
    %cst_29 = arith.constant dense<0.000000e+00> : vector<16x32xf32>
    %104 = tpu.matmul %103, %98, %cst_29 {dimension_numbers = #tpu.dot_dimension_numbers<[1], [0], [0], [1], [0, 0, 1, 1], [], []>} : vector<16x32xbf16>, vector<32x32xbf16>, vector<16x32xf32> -> vector<16x32xf32>
    %cst_30 = arith.constant 6.400000e-04 : f32
    %105 = vector.broadcast %cst_30 : f32 to vector<16x32xf32>
    %106 = arith.addf %104, %105 : vector<16x32xf32>
    %107 = math.rsqrt %106 : vector<16x32xf32>
    %108 = arith.mulf %101, %107 : vector<16x32xf32>
    %109 = vector.extract_strided_slice %1 {offsets = [11, 0], sizes = [1, 32], strides = [1, 1]} : vector<19x32xf32> to vector<1x32xf32>
    %110 = vector.broadcast %109 : vector<1x32xf32> to vector<16x32xf32>
    %111 = arith.mulf %108, %110 : vector<16x32xf32>
    %112 = vector.extract_strided_slice %1 {offsets = [12, 0], sizes = [1, 32], strides = [1, 1]} : vector<19x32xf32> to vector<1x32xf32>
    %113 = vector.broadcast %112 : vector<1x32xf32> to vector<16x32xf32>
    %114 = arith.addf %111, %113 : vector<16x32xf32>
    %115 = arith.mulf %114, %84 : vector<16x32xf32>
    %c128 = arith.constant 128 : index
    %c0_31 = arith.constant 0 : index
    %116 = vector.load %arg2[%c128, %c0_31] : memref<288x32xbf16, #tpu.memory_space<vmem>>, vector<32x32xbf16>
    %117 = arith.truncf %115 : vector<16x32xf32> to vector<16x32xbf16>
    %cst_32 = arith.constant dense<0.000000e+00> : vector<16x32xf32>
    %118 = tpu.matmul %117, %116, %cst_32 {dimension_numbers = #tpu.dot_dimension_numbers<[1], [0], [0], [1], [0, 0, 1, 1], [], []>} : vector<16x32xbf16>, vector<32x32xbf16>, vector<16x32xf32> -> vector<16x32xf32>
    %119 = arith.addf %0, %118 : vector<16x32xf32>
    %120 = vector.extract_strided_slice %1 {offsets = [10, 0], sizes = [1, 32], strides = [1, 1]} : vector<19x32xf32> to vector<1x32xf32>
    %121 = vector.broadcast %120 : vector<1x32xf32> to vector<16x32xf32>
    %122 = arith.addf %119, %121 : vector<16x32xf32>
    %123 = vector.extract_strided_slice %1 {offsets = [13, 0], sizes = [1, 32], strides = [1, 1]} : vector<19x32xf32> to vector<1x32xf32>
    %124 = vector.extract_strided_slice %1 {offsets = [14, 0], sizes = [1, 32], strides = [1, 1]} : vector<19x32xf32> to vector<1x32xf32>
    %cst_33 = arith.constant dense<0.000000e+00> : vector<16xf32>
    %125 = vector.multi_reduction <add>, %122, %cst_33 [1] : vector<16x32xf32> to vector<16xf32>
    %126 = vector.shape_cast %125 : vector<16xf32> to vector<16x1xf32>
    %cst_34 = arith.constant 3.200000e+01 : f32
    %127 = vector.broadcast %cst_34 : f32 to vector<16x1xf32>
    %128 = arith.divf %126, %127 : vector<16x1xf32>
    %129 = vector.broadcast %128 : vector<16x1xf32> to vector<16x32xf32>
    %130 = arith.subf %122, %129 : vector<16x32xf32>
    %131 = arith.mulf %130, %130 : vector<16x32xf32>
    %cst_35 = arith.constant dense<0.000000e+00> : vector<16xf32>
    %132 = vector.multi_reduction <add>, %131, %cst_35 [1] : vector<16x32xf32> to vector<16xf32>
    %133 = vector.shape_cast %132 : vector<16xf32> to vector<16x1xf32>
    %cst_36 = arith.constant 3.200000e+01 : f32
    %134 = vector.broadcast %cst_36 : f32 to vector<16x1xf32>
    %135 = arith.divf %133, %134 : vector<16x1xf32>
    %136 = vector.broadcast %128 : vector<16x1xf32> to vector<16x32xf32>
    %137 = arith.subf %122, %136 : vector<16x32xf32>
    %cst_37 = arith.constant 9.99999974E-6 : f32
    %138 = vector.broadcast %cst_37 : f32 to vector<16x1xf32>
    %139 = arith.addf %135, %138 : vector<16x1xf32>
    %140 = math.rsqrt %139 : vector<16x1xf32>
    %141 = vector.broadcast %140 : vector<16x1xf32> to vector<16x32xf32>
    %142 = arith.mulf %137, %141 : vector<16x32xf32>
    %143 = vector.broadcast %123 : vector<1x32xf32> to vector<16x32xf32>
    %144 = arith.mulf %142, %143 : vector<16x32xf32>
    %145 = vector.broadcast %124 : vector<1x32xf32> to vector<16x32xf32>
    %146 = arith.addf %144, %145 : vector<16x32xf32>
    %c1_i32_38 = arith.constant 1 : i32
    %147 = tpu.dynamic_rotate %146 by %c1_i32_38 dim 0 : vector<16x32xf32>, i32 -> vector<16x32xf32>
    %cst_39 = arith.constant 0.000000e+00 : f32
    %148 = vector.shape_cast %6 : vector<16x1xi1> to vector<16x1xi1>
    %149 = vector.broadcast %148 : vector<16x1xi1> to vector<16x32xi1>
    %150 = vector.broadcast %cst_39 : f32 to vector<16x32xf32>
    %151 = arith.select %149, %147, %150 : vector<16x32xi1>, vector<16x32xf32>
    %152 = arith.subf %151, %146 : vector<16x32xf32>
    %153 = vector.extract_strided_slice %1 {offsets = [15, 0], sizes = [1, 32], strides = [1, 1]} : vector<19x32xf32> to vector<1x32xf32>
    %154 = vector.broadcast %153 : vector<1x32xf32> to vector<16x32xf32>
    %155 = arith.mulf %152, %154 : vector<16x32xf32>
    %156 = arith.addf %146, %155 : vector<16x32xf32>
    %157 = vector.extract_strided_slice %1 {offsets = [16, 0], sizes = [1, 32], strides = [1, 1]} : vector<19x32xf32> to vector<1x32xf32>
    %158 = vector.broadcast %157 : vector<1x32xf32> to vector<16x32xf32>
    %159 = arith.mulf %152, %158 : vector<16x32xf32>
    %160 = arith.addf %146, %159 : vector<16x32xf32>
    %c0_40 = arith.constant 0 : index
    %c0_41 = arith.constant 0 : index
    %161 = vector.load %arg3[%c0_40, %c0_41] : memref<32x96xbf16, #tpu.memory_space<vmem>>, vector<32x96xbf16>
    %162 = arith.truncf %156 : vector<16x32xf32> to vector<16x32xbf16>
    %cst_42 = arith.constant dense<0.000000e+00> : vector<16x96xf32>
    %163 = tpu.matmul %162, %161, %cst_42 {dimension_numbers = #tpu.dot_dimension_numbers<[1], [0], [0], [1], [0, 0, 1, 1], [], []>} : vector<16x32xbf16>, vector<32x96xbf16>, vector<16x96xf32> -> vector<16x96xf32>
    %c0_43 = arith.constant 0 : index
    %c0_44 = arith.constant 0 : index
    %164 = vector.load %arg4[%c0_43, %c0_44] : memref<1x96xf32, #tpu.memory_space<vmem>>, vector<1x96xf32>
    %165 = vector.broadcast %164 : vector<1x96xf32> to vector<16x96xf32>
    %166 = arith.addf %163, %165 : vector<16x96xf32>
    %cst_45 = arith.constant 0.000000e+00 : f32
    %167 = vector.broadcast %cst_45 : f32 to vector<16x96xf32>
    %168 = arith.maximumf %166, %167 : vector<16x96xf32>
    %169 = arith.mulf %168, %168 : vector<16x96xf32>
    %c192 = arith.constant 192 : index
    %c0_46 = arith.constant 0 : index
    %170 = vector.load %arg2[%c192, %c0_46] : memref<288x32xbf16, #tpu.memory_space<vmem>>, vector<96x32xbf16>
    %171 = arith.truncf %169 : vector<16x96xf32> to vector<16x96xbf16>
    %cst_47 = arith.constant dense<0.000000e+00> : vector<16x32xf32>
    %172 = tpu.matmul %171, %170, %cst_47 {dimension_numbers = #tpu.dot_dimension_numbers<[1], [0], [0], [1], [0, 0, 1, 1], [], []>} : vector<16x96xbf16>, vector<96x32xbf16>, vector<16x32xf32> -> vector<16x32xf32>
    %173 = vector.extract_strided_slice %1 {offsets = [17, 0], sizes = [1, 32], strides = [1, 1]} : vector<19x32xf32> to vector<1x32xf32>
    %174 = vector.broadcast %173 : vector<1x32xf32> to vector<16x32xf32>
    %175 = arith.addf %172, %174 : vector<16x32xf32>
    %c160 = arith.constant 160 : index
    %c0_48 = arith.constant 0 : index
    %176 = vector.load %arg2[%c160, %c0_48] : memref<288x32xbf16, #tpu.memory_space<vmem>>, vector<32x32xbf16>
    %177 = arith.truncf %160 : vector<16x32xf32> to vector<16x32xbf16>
    %cst_49 = arith.constant dense<0.000000e+00> : vector<16x32xf32>
    %178 = tpu.matmul %177, %176, %cst_49 {dimension_numbers = #tpu.dot_dimension_numbers<[1], [0], [0], [1], [0, 0, 1, 1], [], []>} : vector<16x32xbf16>, vector<32x32xbf16>, vector<16x32xf32> -> vector<16x32xf32>
    %179 = vector.extract_strided_slice %1 {offsets = [18, 0], sizes = [1, 32], strides = [1, 1]} : vector<19x32xf32> to vector<1x32xf32>
    %180 = vector.broadcast %179 : vector<1x32xf32> to vector<16x32xf32>
    %181 = arith.addf %178, %180 : vector<16x32xf32>
    %cst_50 = arith.constant 5.000000e-01 : f32
    %182 = vector.broadcast %cst_50 : f32 to vector<16x32xf32>
    %183 = arith.mulf %182, %181 : vector<16x32xf32>
    %184 = math.tanh %183 : vector<16x32xf32>
    %cst_51 = arith.constant 1.000000e+00 : f32
    %185 = vector.broadcast %cst_51 : f32 to vector<16x32xf32>
    %186 = arith.addf %184, %185 : vector<16x32xf32>
    %cst_52 = arith.constant 5.000000e-01 : f32
    %187 = vector.broadcast %cst_52 : f32 to vector<16x32xf32>
    %188 = arith.mulf %187, %186 : vector<16x32xf32>
    %189 = arith.mulf %188, %175 : vector<16x32xf32>
    %190 = arith.addf %122, %189 : vector<16x32xf32>
    %c0_53 = arith.constant 0 : index
    %c0_54 = arith.constant 0 : index
    %191 = vector.load %arg8[%c0_53, %c0_54] : memref<16x32xf32, #tpu.memory_space<vmem>>, vector<16x32xf32>
    tpu.vector_store %arg8[%c0_53, %c0_54], %190 {strides = array<i32>} : memref<16x32xf32, #tpu.memory_space<vmem>>, vector<16x32xf32>,
    return
  }
}

</mosaic_0001>

<bundles_post_ra>
// kernel: tpu_custom_call.1
= control target key start
LH: loop header
LB: loop body
LE: loop exit
PB: predicated region body
PF: predicated region fallthrough
CT: control target
= control target key end

     0   :  { %vm43_vm0 = vcmask 261120   ;;  %s1692_s0 = inlined_call_operand.vmem [shape: f32[16,32], index: 0, kind: input, shape index: {}]   ;;  %s1693_s1 = inlined_call_operand.vmem [shape: f32[19,32], index: 1, kind: input, shape index: {}]   ;;  %s1694_s2 = inlined_call_operand.vmem [shape: bf16[288,32], index: 2, kind: input, shape index: {}]   ;;  %s1695_s3 = inlined_call_operand.vmem [shape: bf16[32,96], index: 3, kind: input, shape index: {}]   ;;  %s1696_s4 = inlined_call_operand.vmem [shape: f32[1,96], index: 4, kind: input, shape index: {}]   ;;  %s1697_s5 = inlined_call_operand.vmem [shape: f32[16,64], index: 5, kind: input, shape index: {}]   ;;  %s1698_s6 = inlined_call_operand.vmem [shape: f32[64,32], index: 6, kind: input, shape index: {}]   ;;  %s1699_s7 = inlined_call_operand.vmem [shape: bf16[32,32], index: 7, kind: input, shape index: {}]   ;;  %s1700_s8 = inlined_call_operand.hbm [shape: f32[16,32], index: 8, kind: output, shape index: {}]  }
   0x1   :  { %v1374_v0 = vld [vmem:[%s1692_s0] sm:$0xff]  ;;  %v1379_v1 = vld [vmem:[%s1692_s0 + $0x8] sm:$0xff] }
   0x2   :  { %v44_v2 = vsel %vm43_vm0, %v1374_v0, 0.0  ;;  %v47_v3 = vsel %vm43_vm0, %v1379_v1, 0.0 }
   0x3   :  { %45 = vadd.xlane.f32.xlu0 %v44_v2 }
   0x7   :  { %48 = vadd.xlane.f32.xlu0 %v47_v3 }
   0x8   :  { %13 = vsyncpa [#allocation3], 0  ;;  %v1257_v14 = vld [vmem:[%s1694_s2 + $0x8] sm:$0xff]   ;;  %v1321_v16 = vmov 0.0   ;;  %v1259_v17 = vld [vmem:[%s1694_s2] sm:$0xff]   ;;  %vm1322_vm1 = vmmov 0   ;;  %v36_v23 = vlaneseq }
   0x9   :  { %v1258_v15 = vld [vmem:[%s1694_s2 + $0x28] sm:$0xff]   ;;  %1140 = vmatprep.subr.bf16.mxu1 %v1321_v16  ;;  %1156 = vmatprep.subr.bf16.mxu0 %v1321_v16  ;;  %v1260_v18 = vld [vmem:[%s1694_s2 + $0x20] sm:$0xff]   ;;  %vm492_vm5 = vcmask 523264   ;;  %vm921_vm6 = vcmask 785408  }
   0xa   :  { %1141 = vmatpush3.bf16.msra.mxu1 %v1257_v14  ;;  %1157 = vmatpush3.bf16.msra.mxu0 %v1258_v15  ;;  %v1411_v26 = vshrl.u32 %v36_v23, 7  ;;  %v1419_v28 = vld [vmem:[%s1693_s1] sm:$0xff]  ;;  %v1263_v15 = vld [vmem:[%s1694_s2 + $0x38] sm:$0xff]  }
   0xb   :  { %1142 = vmatprep.subr.bf16.mxu1 %v1321_v16  ;;  %1158 = vmatprep.subr.bf16.mxu0 %v1321_v16 }
   0xc   :  { %1144 = vmatprep.mubr.msk.bf16.mxu1 %vm1322_vm1, %v1321_v16  ;;  %1160 = vmatprep.mubr.msk.bf16.mxu0 %vm1322_vm1, %v1321_v16  ;;  %v1414_v27 = vsub.s32 0, %v1411_v26  ;;  %v1424_v30 = vsub.s32 1, %v1411_v26  ;;  %v38_v35 = vadd.s32 8, %v1411_v26  ;;  %v39_v40 = vand.u32 7, %v1411_v26 }
   0xd   :  { %v114_v43 = vsub.s32 4, %v1411_v26  ;;  %v106_v44 = vsub.s32 3, %v1411_v26  ;;  %vm85_vm2 = vcmp.lt.s32.totalorder %v1411_v26, 1  ;;  %v1442_v49 = vsub.s32 2, %v1411_v26 }
   0xe   :  { %1143 = vmatpush3.bf16.msra.mxu1 %v1259_v17  ;;  %1159 = vmatpush3.bf16.msra.mxu0 %v1260_v18  ;;  %v74_v29 = vrot.slane %v1419_v28, %v1414_v27  ;;  %v80_v33 = vrot.slane %v1419_v28, %v1424_v30  ;;  %v40_v41 = vand.u32 7, %v38_v35  ;;  %vm1433_vm3 = vcmp.ne.s32.totalorder %v39_v40, 0  ;;  %v405_v40 = vld [vmem:[%s1698_s6 + $0x38] sm:$0xff] }
   0xf   :  { %1148 = vmatprep.subr.bf16.mxu1 %v1321_v16  ;;  %1172 = vmatprep.subr.bf16.mxu0 %v1321_v16  ;;  %v115_v52 = vrot.slane %v1419_v28, %v114_v43  ;;  %v107_v53 = vrot.slane %v1419_v28, %v106_v44  ;;  %v99_v58 = vrot.slane %v1419_v28, %v1442_v49 }
  0x10   :  { %vm1437_vm4 = vcmp.ne.s32.totalorder %v40_v41, 0 }
  0x8c   :  { %v46_v4 = vpop.xlane.xlu0 %45 }
  0x8d   :  { %v51_v5 = vmul.f32 0.03125, %v46_v4 }
  0x8f   :  { %v53_v6 = vsub.f32 %v1374_v0, %v51_v5  ;;  %v1261_v5 = vld [vmem:[%s1694_s2 + $0x18] sm:$0xff]  }
  0x90   :  { %v49_v7 = vpop.xlane.xlu0 %48 }
  0x91   :  { %v52_v8 = vmul.f32 0.03125, %v49_v7  ;;  %v55_v9 = vmul.f32 %v53_v6, %v53_v6 }
  0x93   :  { %v54_v10 = vsub.f32 %v1379_v1, %v52_v8  ;;  %v57_v11 = vsel %vm43_vm0, %v55_v9, 0.0 }
  0x94   :  { %58 = vadd.xlane.f32.xlu1 %v57_v11  ;;  %v1262_v11 = vld [vmem:[%s1694_s2 + $0x10] sm:$0xff]  }
  0x95   :  { %v56_v12 = vmul.f32 %v54_v10, %v54_v10 }
  0x97   :  { %v60_v13 = vsel %vm43_vm0, %v56_v12, 0.0 }
  0x98   :  { %61 = vadd.xlane.f32.xlu1 %v60_v13 }
 0x11d   :  { %v59_v19 = vpop.xlane.xlu1 %58 }
 0x11e   :  { %v63_v20 = vmul.f32 0.03125, %v59_v19 }
 0x120   :  { %v65_v21 = vadd.f32 1e-05, %v63_v20  ;;  %v1264_v20 = vld [vmem:[%s1694_s2 + $0x30] sm:$0xff]  }
 0x121   :  { %v62_v22 = vpop.xlane.xlu1 %61 }
 0x122   :  { %1279 = vrsqrt.f32 %v65_v21  ;;  %v64_v24 = vmul.f32 0.03125, %v62_v22 }
 0x124   :  { %v66_v25 = vadd.f32 1e-05, %v64_v24  ;;  %v1495_v24 = vld [vmem:[%s1693_s1 + $0x8] sm:$0xff] }
 0x126   :  { %1281 = vrsqrt.f32 %v66_v25 }
 0x12f   :  { %v1280_v31 = vpop.eup %1279 }
 0x130   :  { %v69_v32 = vmul.f32 %v1280_v31, %v53_v6  ;;  %v122_v6 = vsub.s32 5, %v1411_v26 }
 0x132   :  { %v75_v34 = vmul.f32 %v74_v29, %v69_v32  ;;  %v123_v14 = vrot.slane %v1419_v28, %v122_v6 }
 0x133   :  { %v1282_v36 = vpop.eup %1281 }
 0x134   :  { %v70_v37 = vmul.f32 %v1282_v36, %v54_v10  ;;  %v81_v38 = vadd.f32 %v80_v33, %v75_v34  ;;  %v200_v34 = vsub.s32 7, %v1411_v26 }
 0x136   :  { %v76_v39 = vmul.f32 %v74_v29, %v70_v37  ;;  %v83_v47 = vrot.slane %v81_v38, 7  ;;  %v266_v29 = vrot.slane %v1495_v24, %v1414_v27 }
 0x138   :  { %v82_v42 = vadd.f32 %v80_v33, %v76_v39 }
 0x13a   :  { %v84_v48 = vrot.slane %v82_v42, 7 }
 0x13c   :  { %v86_v50 = vsel %vm85_vm2, %v83_v47, %v84_v48  ;;  %v87_v51 = vsel %vm85_vm2, %v84_v48, %v83_v47  ;;  %v403_v47 = vld [vmem:[%s1698_s6 + $0x28] sm:$0xff]  ;;  %v201_v48 = vrot.slane %v1419_v28, %v200_v34 }
 0x13d   :  { %v92_v54 = vsel %vm1433_vm3, %v87_v51, 0.0  ;;  %v93_v55 = vsel %vm1437_vm4, %v86_v50, 0.0 }
 0x13e   :  { %v94_v56 = vsub.f32 %v92_v54, %v81_v38  ;;  %v95_v57 = vsub.f32 %v93_v55, %v82_v42 }
 0x140   :  { %v116_v59 = vmul.f32 %v115_v52, %v94_v56  ;;  %v117_v60 = vmul.f32 %v115_v52, %v95_v57  ;;  %v108_v61 = vmul.f32 %v107_v53, %v94_v56  ;;  %v109_v62 = vmul.f32 %v107_v53, %v95_v57  ;;  %v402_v53 = vld [vmem:[%s1698_s6 + $0x20] sm:$0xff] }
 0x141   :  { %v100_v9 = vmul.f32 %v99_v58, %v94_v56  ;;  %v101_v10 = vmul.f32 %v99_v58, %v95_v57  ;;  %v124_v18 = vmul.f32 %v123_v14, %v94_v56  ;;  %v125_v19 = vmul.f32 %v123_v14, %v95_v57  ;;  %v401_v57 = vld [vmem:[%s1698_s6 + $0x18] sm:$0xff] }
 0x142   :  { %v118_v63 = vadd.f32 %v116_v59, %v81_v38  ;;  %v119_v2 = vadd.f32 %v117_v60, %v82_v42  ;;  %v110_v3 = vadd.f32 %v108_v61, %v81_v38  ;;  %v111_v4 = vadd.f32 %v109_v62, %v82_v42  ;;  %v400_v61 = vld [vmem:[%s1698_s6 + $0x10] sm:$0xff] }
 0x143   :  { %v102_v12 = vadd.f32 %v100_v9, %v81_v38  ;;  %v103_v13 = vadd.f32 %v101_v10, %v82_v42  ;;  %v126_v21 = vadd.f32 %v124_v18, %v81_v38  ;;  %v127_v22 = vadd.f32 %v125_v19, %v82_v42  ;;  %v404_v38 = vld [vmem:[%s1698_s6 + $0x30] sm:$0xff]  ;;  %v398_v10 = vld [vmem:[%s1698_s6] sm:$0xff] }
 0x144   :  { %v132_v7 = vpack.c.bf16 %v119_v2, %v118_v63  ;;  %v262_v8 = vpack.c.bf16 %v111_v4, %v110_v3  ;;  %v399_v4 = vld [vmem:[%s1698_s6 + $0x8] sm:$0xff] }
 0x145   :  { %v197_v17 = vpack.c.bf16 %v103_v13, %v102_v12  ;;  %v327_v23 = vpack.c.bf16 %v127_v22, %v126_v21 }
 0x146   :  { %1145 = vmatmul.mubr.msk.bf16.vlgmr.msra.gmra.mxu1 %vm43_vm0, %v132_v7  ;;  %1161 = vmatmul.mubr.msk.bf16.vlgmr.msra.gmra.mxu0 %vm43_vm0, %v262_v8 }
 0x147   :  { %1149 = vmatpush3.bf16.msra.mxu1 %v1261_v5  ;;  %1152 = vmatprep.mubr.msk.bf16.mxu1 %vm1322_vm1, %v1321_v16 }
 0x148   :  { %1150 = vmatprep.subr.bf16.mxu1 %v1321_v16  ;;  %1180 = vmatprep.mubr.msk.bf16.mxu0 %vm1322_vm1, %v1321_v16 }
 0x14b   :  { %1151 = vmatpush3.bf16.msra.mxu1 %v1262_v11 }
 0x14c   :  { %1164 = vmatprep.subr.bf16.mxu1 %v1321_v16 }
 0x14e   :  { %1153 = vmatmul.mubr.msk.bf16.vlgmr.msra.gmra.mxu1 %vm43_vm0, %v197_v17 }
 0x14f   :  { %1165 = vmatpush3.bf16.msra.mxu1 %v1263_v15  ;;  %1168 = vmatprep.mubr.msk.bf16.mxu1 %vm1322_vm1, %v1321_v16 }
 0x150   :  { %1166 = vmatprep.subr.bf16.mxu1 %v1321_v16 }
 0x153   :  { %1167 = vmatpush3.bf16.msra.mxu1 %v1264_v20 }
 0x154   :  { %1184 = vmatprep.subr.bf16.mxu1 %v1321_v16 }
 0x156   :  { %1169 = vmatmul.mubr.msk.bf16.vlgmr.msra.gmra.mxu1 %vm43_vm0, %v327_v23 }
 0x157   :  { %1192 = vmatprep.mubr.msk.bf16.mxu1 %vm1322_vm1, %v1321_v16 }
 0x206   :  { %v1497_v25 = vpop.f32.mrf.mxu1  ;;  %v316_v31 = vpop.f32.mrf.mxu0 }
 0x207   :  { %v317_v35 = vadd.f32 %v316_v31, %v266_v29 }
 0x208   :  { %v1146_v32 = vpop.f32.mrf.mxu1  ;;  %v1162_v33 = vpop.f32.mrf.mxu0 }
 0x209   :  { %v424_v50 = vmul.f32 %v404_v38, %v317_v35  ;;  %v422_v59 = vmul.f32 %v402_v53, %v317_v35  ;;  %v420_v8 = vmul.f32 %v400_v61, %v317_v35  ;;  %v418_v18 = vmul.f32 %v398_v10, %v317_v35 }
 0x20a   :  { %v1502_v36 = vpop.f32.mrf.mxu1  ;;  %v319_v37 = vpop.f32.mrf.mxu0 }
 0x20b   :  { %v320_v39 = vadd.f32 %v319_v37, %v266_v29 }
 0x20c   :  { %v1147_v41 = vpop.f32.mrf.mxu1  ;;  %v1163_v42 = vpop.f32.mrf.mxu0 }
 0x20d   :  { %v425_v51 = vmul.f32 %v405_v40, %v320_v39  ;;  %v423_v54 = vmul.f32 %v403_v47, %v320_v39  ;;  %v421_v63 = vmul.f32 %v401_v57, %v320_v39  ;;  %v419_v12 = vmul.f32 %v399_v4, %v320_v39 }
 0x20e   :  { %v251_v52 = vpop.f32.mrf.mxu1  ;;  %v135_v39 = vsub.s32 6, %v1411_v26  ;;  %v1271_v26 = vld [vmem:[%s1694_s2 + $0x58] sm:$0xff]  }
 0x20f   :  { %v429_v56 = vpack.c.bf16 %v425_v51, %v424_v50  ;;  %v252_v58 = vadd.f32 %v251_v52, %v201_v48  ;;  %v428_v3 = vpack.c.bf16 %v423_v54, %v422_v59  ;;  %v427_v14 = vpack.c.bf16 %v421_v63, %v420_v8 }
 0x210   :  { %v1154_v55 = vpop.f32.mrf.mxu1  ;;  %v426_v22 = vpack.c.bf16 %v419_v12, %v418_v18  ;;  %v136_v41 = vrot.slane %v1419_v28, %v135_v39  ;;  %v487_v28 = vld [vmem:[%s1697_s5] sm:$0xff] }
 0x211   :  { %1185 = vmatpush3.bf16.msra.mxu1 %v429_v56  ;;  %v412_v5 = vmul.f32 %v404_v38, %v252_v58  ;;  %v410_v20 = vmul.f32 %v402_v53, %v252_v58  ;;  %v408_v32 = vmul.f32 %v400_v61, %v252_v58  ;;  %v406_v38 = vmul.f32 %v398_v10, %v252_v58  ;;  %v1265_v56 = vld [vmem:[%s1699_s7 + $0x8] sm:$0xff]   ;;  %v1266_v58 = vld [vmem:[%s1699_s7] sm:$0xff]  }
 0x212   :  { %v254_v60 = vpop.f32.mrf.mxu1  ;;  %1186 = vmatprep.subr.bf16.mxu1 %v1321_v16 }
 0x213   :  { %v255_v62 = vadd.f32 %v254_v60, %v201_v48  ;;  %v187_v48 = vadd.f32 %v1497_v25, %v136_v41 }
 0x214   :  { %v1155_v2 = vpop.f32.mrf.mxu1 }
 0x215   :  { %v413_v7 = vmul.f32 %v405_v40, %v255_v62  ;;  %1187 = vmatpush3.bf16.msra.mxu1 %v428_v3  ;;  %v411_v17 = vmul.f32 %v403_v47, %v255_v62  ;;  %v409_v31 = vmul.f32 %v401_v57, %v255_v62  ;;  %v407_v37 = vmul.f32 %v399_v4, %v255_v62 }
 0x216   :  { %v1529_v9 = vpop.f32.mrf.mxu1  ;;  %1188 = vmatprep.subr.bf16.mxu1 %v1321_v16  ;;  %v190_v47 = vadd.f32 %v1502_v36, %v136_v41  ;;  %v488_v36 = vld [vmem:[%s1697_s5 + $0x8] sm:$0xff] }
 0x217   :  { %v417_v11 = vpack.c.bf16 %v413_v7, %v412_v5  ;;  %v416_v23 = vpack.c.bf16 %v411_v17, %v410_v20  ;;  %v415_v33 = vpack.c.bf16 %v409_v31, %v408_v32  ;;  %v414_v40 = vpack.c.bf16 %v407_v37, %v406_v38 }
 0x218   :  { %v1170_v13 = vpop.f32.mrf.mxu1  ;;  %v430_v50 = vpack.c.bf16 %v190_v47, %v187_v48 }
 0x219   :  { %v444_v15 = vsel %vm43_vm0, %v417_v11, 0  ;;  %1189 = vmatpush3.bf16.msra.mxu1 %v427_v14  ;;  %v441_v29 = vsel %vm43_vm0, %v416_v23, 0  ;;  %v438_v35 = vsel %vm43_vm0, %v415_v33, 0  ;;  %v435_v42 = vsel %vm43_vm0, %v414_v40, 0  ;;  %v1267_v13 = vld [vmem:[%s1694_s2 + $0x48] sm:$0xff]   ;;  %v1268_v14 = vld [vmem:[%s1694_s2 + $0x40] sm:$0xff]  }
 0x21a   :  { %v1536_v19 = vpop.f32.mrf.mxu1  ;;  %1173 = vmatpush3.bf16.xpose.msra.mxu0 %v444_v15  ;;  %1190 = vmatprep.subr.bf16.mxu1 %v1321_v16  ;;  %v331_v15 = vrot.slane %v1495_v24, %v1424_v30 }
 0x21b   :  { %1174 = vmatprep.subr.bf16.mxu0 %v1321_v16 }
 0x21c   :  { %v1171_v21 = vpop.f32.mrf.mxu1  ;;  %v382_v17 = vadd.f32 %v1529_v9, %v331_v15  ;;  %v385_v20 = vadd.f32 %v1536_v19, %v331_v15  ;;  %v654_v9 = vrot.slane %v1495_v24, %v106_v44  ;;  %v660_v19 = vrot.slane %v1495_v24, %v114_v43  ;;  %v1269_v15 = vld [vmem:[%s1695_s3 + $0x8] sm:$0xff]  }
 0x21d   :  { %1191 = vmatpush3.bf16.msra.mxu1 %v426_v22  ;;  %v731_v43 = vrot.slane %v1495_v24, %v1442_v49 }
 0x21e   :  { %1196 = vmatprep.subr.bf16.mxu1 %v1321_v16  ;;  %v388_v18 = vmul.f32 0.5, %v382_v17  ;;  %v389_v21 = vmul.f32 0.5, %v385_v20 }
 0x220   :  { %1283 = vtanh.f32 %v388_v18  ;;  %v1273_v18 = vld [vmem:[%s1694_s2 + $0x88] sm:$0xff]  }
 0x221   :  { %1285 = vtanh.f32 %v389_v21  ;;  %v1275_v21 = vld [vmem:[%s1694_s2 + $0x78] sm:$0xff]  }
 0x222   :  { %1175 = vmatpush3.bf16.xpose.msra.mxu0 %v441_v29 }
 0x223   :  { %1176 = vmatprep.subr.bf16.mxu0 %v1321_v16 }
 0x22a   :  { %1177 = vmatpush3.bf16.xpose.msra.mxu0 %v438_v35 }
 0x22b   :  { %1178 = vmatprep.subr.bf16.mxu0 %v1321_v16 }
 0x22d   :  { %v1284_v35 = vpop.eup %1283 }
 0x22e   :  { %v392_v37 = vadd.f32 1.0, %v1284_v35  ;;  %v1286_v38 = vpop.eup %1285  ;;  %v763_v35 = vrot.slane %v1495_v24, %v122_v6 }
 0x230   :  { %v394_v41 = vmul.f32 0.5, %v392_v37 }
 0x232   :  { %1179 = vmatpush3.bf16.xpose.msra.mxu0 %v435_v42  ;;  %v393_v42 = vadd.f32 1.0, %v1286_v38 }
 0x233   :  { %1212 = vmatprep.subr.bf16.mxu0 %v1321_v16 }
 0x239   :  { %1181 = vmatmul.mubr.msk.bf16.vlgmr.msra.gmra.mxu0 %vm43_vm0, %v430_v50 }
 0x23a   :  { %1216 = vmatprep.mubr.msk.bf16.mxu0 %vm1322_vm1, %v1321_v16  ;;  %1213 = vmatpush3.bf16.msra.mxu0 %v1267_v13 }
 0x23b   :  { %1214 = vmatprep.subr.bf16.mxu0 %v1321_v16 }
 0x23e   :  { %1215 = vmatpush3.bf16.msra.mxu0 %v1268_v14 }
 0x23f   :  { %1228 = vmatprep.subr.bf16.mxu0 %v1321_v16 }
 0x2f9   :  { %v480_v51 = vpop.f32.mrf.mxu0 }
 0x2fa   :  { %v489_v54 = vmul.f32 %v487_v28, %v480_v51  ;;  %v396_v51 = vmul.f32 %v394_v41, %v382_v17  ;;  %v395_v28 = vmul.f32 0.5, %v393_v42  ;;  %v1270_v17 = vld [vmem:[%s1695_s3] sm:$0xff]  }
 0x2fb   :  { %v1182_v52 = vpop.f32.mrf.mxu0 }
 0x2fd   :  { %v483_v53 = vpop.f32.mrf.mxu0 }
 0x2fe   :  { %v490_v55 = vmul.f32 %v488_v36, %v483_v53 }
 0x2ff   :  { %v1183_v25 = vpop.f32.mrf.mxu0 }
 0x300   :  { %v491_v57 = vpack.c.bf16 %v490_v55, %v489_v54  ;;  %v397_v55 = vmul.f32 %v395_v28, %v385_v20  ;;  %v1274_v20 = vld [vmem:[%s1694_s2 + $0x80] sm:$0xff]   ;;  %v783_v28 = vrot.slane %v1495_v24, %v200_v34 }
 0x302   :  { %1193 = vmatmul.mubr.msk.bf16.vlgmr.msra.gmra.mxu1 %vm492_vm5, %v491_v57 }
 0x303   :  { %1197 = vmatpush3.bf16.msra.mxu1 %v1265_v56  ;;  %1200 = vmatprep.mubr.msk.bf16.mxu1 %vm1322_vm1, %v1321_v16 }
 0x304   :  { %1198 = vmatprep.subr.bf16.mxu1 %v1321_v16 }
 0x307   :  { %1199 = vmatpush3.bf16.msra.mxu1 %v1266_v58 }
 0x308   :  { %1204 = vmatprep.subr.bf16.mxu1 %v1321_v16 }
 0x3c2   :  { %v530_v59 = vpop.f32.mrf.mxu1 }
 0x3c4   :  { %v1194_v60 = vpop.f32.mrf.mxu1 }
 0x3c6   :  { %v533_v61 = vpop.f32.mrf.mxu1 }
 0x3c7   :  { %v541_v62 = vpack.c.bf16 %v533_v61, %v530_v59 }
 0x3c8   :  { %v1195_v63 = vpop.f32.mrf.mxu1 }
 0x3c9   :  { %1201 = vmatmul.mubr.msk.bf16.vlgmr.msra.gmra.mxu1 %vm43_vm0, %v541_v62 }
 0x3ca   :  { %1205 = vmatpush3.bf16.msra.mxu1 %v1265_v56  ;;  %1208 = vmatprep.mubr.msk.bf16.mxu1 %vm1322_vm1, %v1321_v16 }
 0x3cb   :  { %1206 = vmatprep.subr.bf16.mxu1 %v1321_v16 }
 0x3ce   :  { %1207 = vmatpush3.bf16.msra.mxu1 %v1266_v58 }
 0x3cf   :  { %1220 = vmatprep.subr.bf16.mxu1 %v1321_v16 }
 0x489   :  { %v591_v2 = vpop.f32.mrf.mxu1 }
 0x48a   :  { %v598_v4 = vsub.f32 %v530_v59, %v591_v2 }
 0x48b   :  { %v1202_v3 = vpop.f32.mrf.mxu1 }
 0x48c   :  { %v600_v10 = vmul.f32 %v598_v4, %v598_v4 }
 0x48d   :  { %v594_v5 = vpop.f32.mrf.mxu1 }
 0x48e   :  { %v599_v7 = vsub.f32 %v533_v61, %v594_v5 }
 0x48f   :  { %v1203_v8 = vpop.f32.mrf.mxu1 }
 0x490   :  { %v601_v11 = vmul.f32 %v599_v7, %v599_v7 }
 0x492   :  { %v602_v12 = vpack.c.bf16 %v601_v11, %v600_v10 }
 0x494   :  { %1209 = vmatmul.mubr.msk.bf16.vlgmr.msra.gmra.mxu1 %vm43_vm0, %v602_v12 }
 0x495   :  { %1224 = vmatprep.mubr.msk.bf16.mxu1 %vm1322_vm1, %v1321_v16  ;;  %1221 = vmatpush3.bf16.msra.mxu1 %v1269_v15 }
 0x496   :  { %1222 = vmatprep.subr.bf16.mxu1 %v1321_v16 }
 0x499   :  { %1223 = vmatpush3.bf16.msra.mxu1 %v1270_v17 }
 0x49a   :  { %1244 = vmatprep.subr.bf16.mxu1 %v1321_v16 }
 0x554   :  { %v640_v22 = vpop.f32.mrf.mxu1 }
 0x555   :  { %v641_v23 = vadd.f32 0.00064, %v640_v22 }
 0x556   :  { %v1210_v29 = vpop.f32.mrf.mxu1 }
 0x557   :  { %1287 = vrsqrt.f32 %v641_v23 }
 0x558   :  { %v643_v31 = vpop.f32.mrf.mxu1 }
 0x559   :  { %v644_v32 = vadd.f32 0.00064, %v643_v31 }
 0x55a   :  { %v1211_v33 = vpop.f32.mrf.mxu1 }
 0x55b   :  { %1289 = vrsqrt.f32 %v644_v32 }
 0x564   :  { %v1288_v40 = vpop.eup %1287 }
 0x565   :  { %v649_v47 = vmul.f32 %v1288_v40, %v598_v4 }
 0x567   :  { %v655_v48 = vmul.f32 %v654_v9, %v649_v47 }
 0x568   :  { %v1290_v50 = vpop.eup %1289 }
 0x569   :  { %v650_v52 = vmul.f32 %v1290_v50, %v599_v7  ;;  %v661_v36 = vadd.f32 %v660_v19, %v655_v48 }
 0x56b   :  { %v656_v53 = vmul.f32 %v654_v9, %v650_v52  ;;  %v663_v54 = vmul.f32 %v661_v36, %v396_v51  ;;  %v769_v9 = vrot.slane %v1495_v24, %v135_v39 }
 0x56d   :  { %v662_v25 = vadd.f32 %v660_v19, %v656_v53  ;;  %v35_v53 = vld [vmem:[%s1693_s1 + $0x10] sm:$0x7] }
 0x56e   :  { %v791_v34 = vrot.slane %v35_v53, %v1414_v27 }
 0x56f   :  { %v664_v56 = vmul.f32 %v662_v25, %v397_v55 }
 0x571   :  { %v669_v44 = vpack.c.bf16 %v664_v56, %v663_v54 }
 0x573   :  { %1217 = vmatmul.mubr.msk.bf16.vlgmr.msra.gmra.mxu0 %vm43_vm0, %v669_v44 }
 0x574   :  { %1240 = vmatprep.mubr.msk.bf16.mxu0 %vm1322_vm1, %v1321_v16  ;;  %1229 = vmatpush3.bf16.msra.mxu0 %v1273_v18 }
 0x575   :  { %1230 = vmatprep.subr.bf16.mxu0 %v1321_v16 }
 0x578   :  { %1231 = vmatpush3.bf16.msra.mxu0 %v1274_v20  ;;  %v974_v20 = vrot.slane %v35_v53, %v1442_v49 }
 0x579   :  { %1232 = vmatprep.subr.bf16.mxu0 %v1321_v16 }
 0x57c   :  { %1233 = vmatpush3.bf16.msra.mxu0 %v1275_v21 }
 0x57d   :  { %1234 = vmatprep.subr.bf16.mxu0 %v1321_v16 }
 0x633   :  { %v719_v57 = vpop.f32.mrf.mxu0 }
 0x634   :  { %v726_v58 = vadd.f32 %v719_v57, %v1374_v0  ;;  %v1272_v57 = vld [vmem:[%s1694_s2 + $0x50] sm:$0xff]  }
 0x635   :  { %v1218_v59 = vpop.f32.mrf.mxu0 }
 0x636   :  { %v1604_v60 = vadd.f32 %v731_v43, %v726_v58 }
 0x637   :  { %v722_v61 = vpop.f32.mrf.mxu0 }
 0x638   :  { %v727_v62 = vadd.f32 %v722_v61, %v1379_v1  ;;  %v734_v63 = vsel %vm43_vm0, %v1604_v60, 0.0  ;;  %v1276_v61 = vld [vmem:[%s1694_s2 + $0x70] sm:$0xff]  }
 0x639   :  { %735 = vadd.xlane.f32.xlu0 %v734_v63  ;;  %v1219_v2 = vpop.f32.mrf.mxu0  ;;  %1235 = vmatpush3.bf16.msra.mxu0 %v1276_v61  ;;  %v1278_v63 = vld [vmem:[%s1694_s2 + $0x60] sm:$0xff]  }
 0x63a   :  { %v1609_v3 = vadd.f32 %v731_v43, %v727_v62  ;;  %1236 = vmatprep.subr.bf16.mxu0 %v1321_v16  ;;  %v1277_v62 = vld [vmem:[%s1694_s2 + $0x68] sm:$0xff]   ;;  %v1082_v2 = vld [vmem:[%s1696_s4] ss:$0 sm:$0xff]  ;;  %s1323_s2 = smov [#allocation2]  }
 0x63b   :  { %s1050_s4 = sshll.u32 %s1323_s2, 4  ;;  %s1051_s4 = int_to_ptr.vmem [resolvable:$true] %s1050_s4 }
 0x63c   :  { %v737_v4 = vsel %vm43_vm0, %v1609_v3, 0.0  ;;  %s1299_s5 = scalar_lea.vmem %s1051_s4, 256  ;;  %p1304_p1 = scmp.lt.s32.totalorder %s1051_s4, %s1051_s4 }
 0x63d   :  { %738 = vadd.xlane.f32.xlu1 %v737_v4  ;;  %1237 = vmatpush3.bf16.msra.mxu0 %v1277_v62  ;;  %p1300_p0 = scmp.ne.s32.totalorder %s1051_s4, %s1299_s5  ;;  %p1305_p2 = scmp.lt.s32.totalorder %s1299_s5, %s1299_s5 }
 0x63e   :  { %1238 = vmatprep.subr.bf16.mxu0 %v1321_v16 }
 0x63f   :  { %p1306_p3 = por %p1305_p2, %p1304_p1 }
 0x641   :  { %1239 = vmatpush3.bf16.msra.mxu0 %v1278_v63  ;;  %p1307_p4 = pnand %p1306_p3, %p1300_p0 }
 0x6c2   :  { %v736_v5 = vpop.xlane.xlu0 %735 }
 0x6c3   :  { %v740_v7 = vmul.f32 0.03125, %v736_v5 }
 0x6c5   :  { %v742_v0 = vsub.f32 %v1604_v60, %v740_v7 }
 0x6c6   :  { %v739_v8 = vpop.xlane.xlu1 %738 }
 0x6c7   :  { %v741_v10 = vmul.f32 0.03125, %v739_v8  ;;  %v744_v11 = vmul.f32 %v742_v0, %v742_v0 }
 0x6c9   :  { %v743_v1 = vsub.f32 %v1609_v3, %v741_v10  ;;  %v746_v12 = vsel %vm43_vm0, %v744_v11, 0.0 }
 0x6ca   :  { %747 = vadd.xlane.f32.xlu0 %v746_v12 }
 0x6cb   :  { %v745_v13 = vmul.f32 %v743_v1, %v743_v1 }
 0x6cd   :  { %v749_v14 = vsel %vm43_vm0, %v745_v13, 0.0 }
 0x6ce   :  { %750 = vadd.xlane.f32.xlu1 %v749_v14 }
 0x753   :  { %v748_v22 = vpop.xlane.xlu0 %747 }
 0x754   :  { %v752_v23 = vmul.f32 0.03125, %v748_v22 }
 0x756   :  { %v754_v29 = vadd.f32 1e-05, %v752_v23 }
 0x757   :  { %v751_v31 = vpop.xlane.xlu1 %750 }
 0x758   :  { %1291 = vrsqrt.f32 %v754_v29  ;;  %v753_v32 = vmul.f32 0.03125, %v751_v31 }
 0x75a   :  { %v755_v33 = vadd.f32 1e-05, %v753_v32  ;;  %v884_v32 = vrot.slane %v35_v53, %v1424_v30 }
 0x75c   :  { %1293 = vrsqrt.f32 %v755_v33 }
 0x765   :  { %v1292_v37 = vpop.eup %1291 }
 0x766   :  { %v758_v38 = vmul.f32 %v1292_v37, %v742_v0 }
 0x768   :  { %v764_v40 = vmul.f32 %v763_v35, %v758_v38 }
 0x769   :  { %v1294_v19 = vpop.eup %1293 }
 0x76a   :  { %v759_v41 = vmul.f32 %v1294_v19, %v743_v1  ;;  %v770_v42 = vadd.f32 %v769_v9, %v764_v40 }
 0x76c   :  { %v765_v47 = vmul.f32 %v763_v35, %v759_v41  ;;  %v772_v50 = vrot.slane %v770_v42, 7 }
 0x76e   :  { %v771_v48 = vadd.f32 %v769_v9, %v765_v47 }
 0x770   :  { %v773_v51 = vrot.slane %v771_v48, 7 }
 0x772   :  { %v774_v6 = vsel %vm85_vm2, %v772_v50, %v773_v51  ;;  %v775_v52 = vsel %vm85_vm2, %v773_v51, %v772_v50 }
 0x773   :  { %v776_v39 = vsel %vm1433_vm3, %v775_v52, 0.0  ;;  %v777_v36 = vsel %vm1437_vm4, %v774_v6, 0.0 }
 0x774   :  { %v778_v54 = vsub.f32 %v776_v39, %v770_v42  ;;  %v779_v55 = vsub.f32 %v777_v36, %v771_v48 }
 0x776   :  { %v784_v25 = vmul.f32 %v783_v28, %v778_v54  ;;  %v785_v24 = vmul.f32 %v783_v28, %v779_v55  ;;  %v792_v43 = vmul.f32 %v791_v34, %v778_v54  ;;  %v793_v46 = vmul.f32 %v791_v34, %v779_v55 }
 0x778   :  { %v786_v56 = vadd.f32 %v784_v25, %v770_v42  ;;  %v787_v44 = vadd.f32 %v785_v24, %v771_v48  ;;  %v794_v27 = vadd.f32 %v792_v43, %v770_v42  ;;  %v795_v58 = vadd.f32 %v793_v46, %v771_v48 }
 0x77a   :  { %v800_v45 = vpack.c.bf16 %v787_v44, %v786_v56  ;;  %v970_v59 = vpack.c.bf16 %v795_v58, %v794_v27 }
 0x77c   :  { %1225 = vmatmul.mubr.msk.bf16.vlgmr.msra.gmra.mxu1 %vm43_vm0, %v800_v45 }
 0x77d   :  { %1245 = vmatpush3.bf16.msra.mxu1 %v1271_v26  ;;  %1248 = vmatprep.mubr.msk.bf16.mxu1 %vm1322_vm1, %v1321_v16 }
 0x77e   :  { %1246 = vmatprep.subr.bf16.mxu1 %v1321_v16 }
 0x781   :  { %1247 = vmatpush3.bf16.msra.mxu1 %v1272_v57 }
 0x784   :  { %1249 = vmatmul.mubr.msk.bf16.vlgmr.msra.gmra.mxu1 %vm43_vm0, %v970_v59 }
 0x83c   :  { %v857_v4 = vpop.f32.mrf.mxu1 }
 0x83d   :  { %v858_v5 = vadd.f32 %v1082_v2, %v857_v4 }
 0x83e   :  { %v1226_v7 = vpop.f32.mrf.mxu1 }
 0x83f   :  { %v864_v8 = vmax.f32 %v858_v5, 0.0 }
 0x840   :  { %v860_v0 = vpop.f32.mrf.mxu1 }
 0x841   :  { %v861_v10 = vadd.f32 %v1082_v2, %v860_v0  ;;  %v866_v13 = vmul.f32 %v864_v8, %v864_v8 }
 0x842   :  { %v1227_v11 = vpop.f32.mrf.mxu1 }
 0x843   :  { %v865_v1 = vmax.f32 %v861_v10, 0.0 }
 0x844   :  { %v1024_v12 = vpop.f32.mrf.mxu1 }
 0x845   :  { %v867_v16 = vmul.f32 %v865_v1, %v865_v1  ;;  %v1025_v21 = vadd.f32 %v1024_v12, %v974_v20 }
 0x846   :  { %v1250_v14 = vpop.f32.mrf.mxu1 }
 0x847   :  { %v880_v15 = vpack.c.bf16 %v867_v16, %v866_v13  ;;  %v1031_v22 = vmul.f32 0.5, %v1025_v21 }
 0x848   :  { %v1027_v17 = vpop.f32.mrf.mxu1 }
 0x849   :  { %1241 = vmatmul.mubr.msk.bf16.vlgmr.msra.gmra.mxu0 %vm921_vm6, %v880_v15  ;;  %v1028_v23 = vadd.f32 %v1027_v17, %v974_v20  ;;  %1295 = vtanh.f32 %v1031_v22 }
 0x84a   :  { %v1251_v18 = vpop.f32.mrf.mxu1 }
 0x84b   :  { %v1032_v29 = vmul.f32 0.5, %v1028_v23 }
 0x84d   :  { %1297 = vtanh.f32 %v1032_v29 }
 0x856   :  { %v1296_v31 = vpop.eup %1295 }
 0x857   :  { %v1035_v33 = vadd.f32 1.0, %v1296_v31 }
 0x859   :  { %v1037_v9 = vmul.f32 0.5, %v1035_v33 }
 0x85a   :  { %v1298_v35 = vpop.eup %1297 }
 0x85b   :  { %v1036_v40 = vadd.f32 1.0, %v1298_v35 }
 0x85d   :  { %v1038_v48 = vmul.f32 0.5, %v1036_v40 }
 0x909   :  { %v959_v37 = vpop.f32.mrf.mxu0 }
 0x90a   :  { %v960_v38 = vadd.f32 %v959_v37, %v884_v32 }
 0x90b   :  { %v1242_v19 = vpop.f32.mrf.mxu0 }
 0x90c   :  { %v1039_v41 = vmul.f32 %v1037_v9, %v960_v38 }
 0x90d   :  { %v962_v42 = vpop.f32.mrf.mxu0 }
 0x90e   :  { %v1041_v49 = vadd.f32 %v1039_v41, %v1604_v60  ;;  %v963_v47 = vadd.f32 %v962_v42, %v884_v32 }
 0x90f   :  { %v1243_v50 = vpop.f32.mrf.mxu0 }
 0x910   :  { %1043 = vst.msk [vmem:[#allocation2] sm:$0xff] %vm43_vm0, %v1041_v49  ;;  %v1040_v51 = vmul.f32 %v1038_v48, %v963_v47 }
 0x912   :  { %v1042_v30 = vadd.f32 %v1040_v51, %v1609_v3 }
 0x914   :  { %1044 = vst.msk [vmem:[#allocation2 + $0x8] sm:$0xff] %vm43_vm0, %v1042_v30 }
 0x915   :  { %1310 = shalt.err (!%p1307_p4)
}
 0x916   :  { %s1324_s7 = smov 128   ;;  %s1325_s28 = smov 8  }
 0x917   :  { %1056 = dma.vmem_to_hbm [thread:$0]  %s1051_s4, 256, %s1700_s8, [#allocation3], %s1324_s7, %s1324_s7, %s1325_s28  }
 0x918   :  { %1319 = dma.done.wait [#allocation3], 256  }
 0x919   :  { %1320 = vsyncadd [#allocation3], 4294967040 }
 0x91a   :  { %1060 = vsyncpa [#allocation3], 1 }

</bundles_post_ra>
